<compile_context>
chip_gen: v7x
topology: tpu7x:2x2x1
jax: 0.10.0
libtpu: 0.0.40
codegen_flags: <defaults>
</compile_context>

<pallas_src>
import jax
import jax.numpy as jnp
from jax.experimental import pallas as pl
from jax.experimental.pallas import tpu as pltpu


_LANE_CANDIDATES = (512, 256, 128)   # copy-free lane-dense last dims
_FALLBACK_LANE = 512                 # pad path lane width
_TILE_BYTES = 4 * 1024 * 1024        # combined in+out bytes per grid step
_MIN_KERNEL_BYTES = 256 * 1024       # below this, plain lam(x) wins


def _cdiv(a, b):
    return -(-a // b)


def _round_up(a, b):
    return _cdiv(a, b) * b


def _make_lambda_kernel(lam):
    def kernel(x_ref, o_ref):
        # Lane-dense, (sub,128)-aligned tile; full-tile store (edge blocks are
        # masked by Pallas automatically).
        o_ref[...] = lam(x_ref[...])
    return kernel


def nn_lambda(x, lam=None, *, min_bytes_for_kernel=_MIN_KERNEL_BYTES):
    """Pallas equivalent of nnLambda(lam)(x).

    `lam=None` means the default identity lambda (nnLambda() default ctor).
    """
    if lam is None:
        # Identity forward: no kernel launch (saves 2x HBM traffic).
        return x

    # TODO(synk): nnLambda also permits multi-argument / non-elementwise
    # lambdas; the kernel path handles the single-tensor elementwise case and
    # everything else falls back to a direct lam(x) call.

    orig_shape = x.shape
    n = int(x.size)
    in_dtype = jnp.dtype(x.dtype)
    in_itemsize = in_dtype.itemsize

    if n == 0:
        return lam(x)

    # Probe the lambda on a minimal (8,128) tile: gives the output dtype and
    # verifies it is rank-agnostic and shape-preserving (truly elementwise).
    try:
        probe = jax.eval_shape(lam, jax.ShapeDtypeStruct((8, 128), in_dtype))
        if tuple(probe.shape) != (8, 128):
            return lam(x)
        out_dtype = jnp.dtype(probe.dtype)
    except Exception:
        return lam(x)

    # Tiny inputs: custom-call launch + reshapes are pure overhead.
    if n * in_itemsize < min_bytes_for_kernel:
        return lam(x)

    out_itemsize = out_dtype.itemsize

    # Sublane alignment from the stricter of input AND output packed dtypes:
    # 8 (32-bit), 16 (16-bit), 32 (8-bit).
    sub = max(8, 32 // max(in_itemsize, 1), 32 // max(out_itemsize, 1))

    # Prefer a copy-free lane-dense 2-D view (no pad, no trailing slice).
    lane = None
    for cand in _LANE_CANDIDATES:
        if n % cand == 0:
            lane = cand
            break

    if lane is not None:
        rows = n // lane
        x2d = x.reshape(rows, lane)
        padded = False
    else:
        # Awkward size: single pad to rows*lane (< lane extra elements), no
        # round-up to a tile multiple.
        lane = _FALLBACK_LANE
        rows = _cdiv(n, lane)
        flat = x.reshape(-1)
        pad = rows * lane - n
        if pad:
            flat = jnp.pad(flat, (0, pad))
        x2d = flat.reshape(rows, lane)
        padded = True

    # Tile sizing.
    if rows <= sub:
        # Block == full array (legal even if rows isn't a sublane multiple).
        tile_r = rows
    else:
        bytes_per_row = lane * (in_itemsize + out_itemsize)
        budget_rows = max(sub, (_TILE_BYTES // bytes_per_row) // sub * sub)
        # Force >= 2 grid steps when possible so the "parallel" axis spans
        # both TensorCores on dual-TC parts (v7x).
        half_rows = max(sub, _round_up(_cdiv(rows, 2), sub))
        tile_r = min(budget_rows, half_rows)

    grid = (_cdiv(rows, tile_r),)

    # Explicit VMEM budget: double-buffered in+out tiles plus headroom.
    tile_bytes = tile_r * lane * (in_itemsize + out_itemsize)
    vmem_limit = int(min(64 * 1024 * 1024, 2 * tile_bytes + 8 * 1024 * 1024))

    out2d = pl.pallas_call(
        _make_lambda_kernel(lam),
        out_shape=jax.ShapeDtypeStruct((rows, lane), out_dtype),
        grid=grid,
        in_specs=[pl.BlockSpec((tile_r, lane), lambda i: (i, 0))],
        out_specs=pl.BlockSpec((tile_r, lane), lambda i: (i, 0)),
        compiler_params=pltpu.CompilerParams(
            dimension_semantics=("parallel",),
            vmem_limit_bytes=vmem_limit,
        ),
    )(x2d)

    if padded:
        # Zero padding may produce inf/NaN under some lambdas; harmless — it
        # is sliced off here and never feeds a reduction.
        return out2d.reshape(-1)[:n].reshape(orig_shape)
    return out2d.reshape(orig_shape)


if __name__ == "__main__":
    key = jax.random.PRNGKey(0)
    # Small NCHW input consistent with a generic tensor flowing through nnLambda.
    x = jax.random.normal(key, (2, 4, 16, 16), dtype=jnp.float32)

    # 1) Default lambda: identity (nnLambda()) — short-circuited, no kernel.
    y = nn_lambda(x)
    jax.block_until_ready(y)
    assert y.shape == x.shape and y.dtype == x.dtype
    assert bool(jnp.allclose(y, x)), "identity lambda mismatch"

    # 2) Elementwise affine lambda through the kernel path (copy-free reshape,
    #    single full-array block).  min_bytes_for_kernel=0 forces the kernel
    #    even at this demo size.
    y2 = nn_lambda(x, lam=lambda t: 2.0 * t + 1.0, min_bytes_for_kernel=0)
    jax.block_until_ready(y2)
    assert y2.shape == x.shape and y2.dtype == x.dtype
    assert bool(jnp.allclose(y2, 2.0 * x + 1.0, atol=1e-6)), "affine lambda mismatch"

    # 3) Dtype-changing lambda on a packed input dtype: bf16 in, f32 out.
    x_bf16 = x.astype(jnp.bfloat16)
    y3 = nn_lambda(x_bf16, lam=lambda t: jnp.exp(t.astype(jnp.float32)),
                   min_bytes_for_kernel=0)
    jax.block_until_ready(y3)
    assert y3.shape == x.shape and y3.dtype == jnp.float32
    ref3 = jnp.exp(x_bf16.astype(jnp.float32))
    assert bool(jnp.allclose(y3, ref3, atol=1e-5, rtol=1e-5)), "bf16->f32 lambda mismatch"

    # 4) Multi-step grid (rows split so the parallel axis has >= 2 steps).
    x_big = jax.random.normal(key, (32, 512), dtype=jnp.float32)
    y4 = nn_lambda(x_big, lam=lambda t: jnp.tanh(t), min_bytes_for_kernel=0)
    jax.block_until_ready(y4)
    assert bool(jnp.allclose(y4, jnp.tanh(x_big), atol=1e-6)), "multi-step grid mismatch"

    # 5) Awkward size -> pad fallback path (single pad + trailing slice).
    x_odd = jax.random.normal(key, (2, 7, 9), dtype=jnp.float32)
    y5 = nn_lambda(x_odd, lam=lambda t: t * t, min_bytes_for_kernel=0)
    jax.block_until_ready(y5)
    assert y5.shape == x_odd.shape
    assert bool(jnp.allclose(y5, x_odd * x_odd, atol=1e-6)), "pad-path lambda mismatch"

    # 6) Non-elementwise lambda -> graceful fallback to plain lam(x).
    y6 = nn_lambda(x, lam=lambda t: t.sum(), min_bytes_for_kernel=0)
    jax.block_until_ready(y6)
    assert bool(jnp.allclose(y6, x.sum(), atol=1e-4)), "non-elementwise fallback mismatch"

    print("KERNEL_OK")
</pallas_src>

<mosaic_0001>
module attributes {stable_mosaic.version = 11 : i64} {
  func.func @kernel(%arg0: i32, %arg1: memref<4x512xf32, #tpu.memory_space<vmem>>, %arg2: memref<4x512xf32, #tpu.memory_space<vmem>>) attributes {dimension_semantics = [#tpu.dimension_semantics<parallel>], iteration_bounds = array<i64: 1>, scalar_prefetch = 0 : i64, scratch_operands = 0 : i64, tpu.core_type = #tpu.core_type<tc>, window_params = [{transform_indices = @transform_0, window_bounds = array<i64: 4, 512>}, {transform_indices = @transform_1, window_bounds = array<i64: 4, 512>}]} {
    %c0 = arith.constant 0 : index
    %c0_0 = arith.constant 0 : index
    %0 = vector.load %arg1[%c0, %c0_0] : memref<4x512xf32, #tpu.memory_space<vmem>>, vector<4x512xf32>
    %cst = arith.constant 2.000000e+00 : f32
    %1 = vector.broadcast %cst : f32 to vector<4x512xf32>
    %2 = arith.mulf %1, %0 : vector<4x512xf32>
    %cst_1 = arith.constant 1.000000e+00 : f32
    %3 = vector.broadcast %cst_1 : f32 to vector<4x512xf32>
    %4 = arith.addf %2, %3 : vector<4x512xf32>
    %c0_2 = arith.constant 0 : index
    %c0_3 = arith.constant 0 : index
    %5 = vector.load %arg2[%c0_2, %c0_3] : memref<4x512xf32, #tpu.memory_space<vmem>>, vector<4x512xf32>
    tpu.vector_store %arg2[%c0_2, %c0_3], %4 {strides = array<i32>} : memref<4x512xf32, #tpu.memory_space<vmem>>, vector<4x512xf32>,
    return
  }
  func.func @transform_0(%arg0: i32) -> (i32, i32) {
    %c0_i32 = arith.constant 0 : i32
    %c0_i32_0 = arith.constant 0 : i32
    return %arg0, %c0_i32 : i32, i32
  }
  func.func @transform_1(%arg0: i32) -> (i32, i32) {
    %c0_i32 = arith.constant 0 : i32
    %c0_i32_0 = arith.constant 0 : i32
    return %arg0, %c0_i32 : i32, i32
  }
}

</mosaic_0001>

<bundles_post_ra>
// kernel: tpu_custom_call.1
= control target key start
LH: loop header
LB: loop body
LE: loop exit
PB: predicated region body
PF: predicated region fallthrough
CT: control target
= control target key end

     0   :  { %6 = vsyncpa [#allocation3], 0  ;;  %s130_s0 = inlined_call_operand.hbm [shape: f32[4,512], index: 0, kind: input, shape index: {}]   ;;  %s131_s1 = inlined_call_operand.hbm [shape: f32[4,512], index: 1, kind: output, shape index: {}]  }
   0x1   :  { %7 = vsyncpa [#allocation4], 0  ;;  %s94_s6 = smov [#allocation2]   ;;  %s46_s10 = scalar_lea.hbm %s130_s0, 256 }
   0x2   :  { %s14_s7 = sshll.u32 %s94_s6, 4  ;;  %p47_p0 = scmp.ne.s32.totalorder %s130_s0, %s46_s10  ;;  %s15_s7 = int_to_ptr.vmem [resolvable:$true] %s14_s7 }
   0x3   :  { %p50_p1 = scmp.lt.u32.totalorder %s46_s10, %s130_s0 }
   0x5   :  { %p52_p2 = pnand %p50_p1, %p47_p0 }
   0x7   :  { %55 = shalt.err (!%p52_p2)
}
   0x8   :  { %s56_s15 = scalar_lea.vmem %s15_s7, 256  ;;  %p61_p4 = scmp.lt.s32.totalorder %s15_s7, %s15_s7 }
   0x9   :  { %p57_p3 = scmp.ne.s32.totalorder %s15_s7, %s56_s15  ;;  %p62_p5 = scmp.lt.s32.totalorder %s56_s15, %s56_s15 }
   0xb   :  { %p63_p6 = por %p62_p5, %p61_p4 }
   0xd   :  { %p64_p7 = pnand %p63_p6, %p57_p3 }
   0xf   :  { %67 = shalt.err (!%p64_p7)
}
  0x10   :  { %17 = dma.hbm_to_vmem [thread:$0]  %s130_s0, 256, %s15_s7, [#allocation3]  }
  0x11   :  { %90 = dma.done.wait [#allocation3], 256  }
  0x12   :  { %91 = vsyncadd [#allocation3], 4294967040  ;;  %v21_v0 = vld [vmem:[#allocation2] sm:$0xff]  ;;  %v22_v1 = vld [vmem:[#allocation2 + $0x8] sm:$0xff]  ;;  %s95_s18 = smov [#allocation5]  }
  0x13   :  { %s35_s19 = sshll.u32 %s95_s18, 4  ;;  %v23_v2 = vmul.f32 2.0, %v21_v0  ;;  %v24_v3 = vmul.f32 2.0, %v22_v1  ;;  %s36_s19 = int_to_ptr.vmem [resolvable:$true] %s35_s19 }
  0x14   :  { %s68_s20 = scalar_lea.vmem %s36_s19, 256  ;;  %p73_p9 = scmp.lt.s32.totalorder %s36_s19, %s36_s19 }
  0x15   :  { %v25_v4 = vadd.f32 1.0, %v23_v2  ;;  %v26_v5 = vadd.f32 1.0, %v24_v3  ;;  %p69_p8 = scmp.ne.s32.totalorder %s36_s19, %s68_s20  ;;  %p74_p10 = scmp.lt.s32.totalorder %s68_s20, %s68_s20 }
  0x17   :  { %27 = vst [vmem:[#allocation5] sm:$0xff] %v25_v4  ;;  %28 = vst [vmem:[#allocation5 + $0x8] sm:$0xff] %v26_v5  ;;  %p75_p11 = por %p74_p10, %p73_p9 }
  0x19   :  { %p76_p12 = pnand %p75_p11, %p69_p8 }
  0x1b   :  { %79 = shalt.err (!%p76_p12)
}
  0x1c   :  { %s80_s22 = scalar_lea.hbm %s131_s1, 256 }
  0x1d   :  { %p81_p13 = scmp.ne.s32.totalorder %s131_s1, %s80_s22  ;;  %p84_p0 = scmp.lt.u32.totalorder %s80_s22, %s131_s1 }
  0x1f   :  { %p86_p1 = pnand %p84_p0, %p81_p13 }
  0x21   :  { %89 = shalt.err (!%p86_p1)
}
  0x22   :  { %38 = dma.vmem_to_hbm [thread:$0]  %s36_s19, 256, %s131_s1, [#allocation4]  }
  0x23   :  { %92 = dma.done.wait [#allocation4], 256  }
  0x24   :  { %93 = vsyncadd [#allocation4], 4294967040 }
  0x25   :  { %42 = vsyncpa [#allocation3], 1 }
  0x26   :  { %43 = vsyncpa [#allocation4], 1 }

</bundles_post_ra>
